<compile_context>
chip_gen: v6e
topology: v6e:2x2x1
jax: 0.10.0
libtpu: 0.0.40
codegen_flags: <defaults>
</compile_context>

<pallas_src>
import jax
import jax.numpy as jnp
from jax.experimental import pallas as pl
from jax.experimental.pallas import tpu as pltpu

LANE = 128


def _round_up(n, m):
    return ((n + m - 1) // m) * m


def mlp_kernel(x_ref, w1_ref, b1_ref, w2_ref, b2_ref, w3_ref, b3_ref, o_ref):
    # x / weight refs are bf16 (native MXU input); accumulation + elementwise
    # chain (bias add, ReLU, softmax) stay in f32.
    x = x_ref[...]

    h = jnp.dot(x, w1_ref[...], preferred_element_type=jnp.float32) + b1_ref[...]
    h = jnp.maximum(h, 0.0)                                   # ReLU

    h = jnp.dot(h.astype(jnp.bfloat16), w2_ref[...],
                preferred_element_type=jnp.float32) + b2_ref[...]
    h = jnp.maximum(h, 0.0)                                   # ReLU

    # Final layer is lane-padded to a multiple of 128; padded columns carry a
    # huge negative bias so exp() -> 0 and the softmax over the padded row is
    # identical to the softmax over the real columns.
    logits = jnp.dot(h.astype(jnp.bfloat16), w3_ref[...],
                     preferred_element_type=jnp.float32) + b3_ref[...]

    m = jnp.max(logits, axis=-1, keepdims=True)
    e = jnp.exp(logits - m)
    denom = jnp.sum(e, axis=-1, keepdims=True)
    o_ref[...] = (e * pl.reciprocal(denom, approx=True)).astype(o_ref.dtype)


def simple_nn_forward(x, params, *, batch_tile=512):
    """Fused MLP forward. x: [B, input_size] float32. Returns [B, output_size] f32."""
    (w1, b1), (w2, b2), (w3, b3) = params
    B, F = x.shape
    H1 = w1.shape[1]
    H2 = w2.shape[1]
    OUT = w3.shape[1]
    OUT_PAD = _round_up(max(OUT, LANE), LANE)

    # bf16 MXU inputs; f32 accumulation happens inside the kernel.
    xb = x.astype(jnp.bfloat16)
    w1b = w1.astype(jnp.bfloat16)
    w2b = w2.astype(jnp.bfloat16)
    # Lane-pad the last layer; -1e30 bias on pad columns masks them in softmax.
    w3p = jnp.zeros((H2, OUT_PAD), jnp.bfloat16).at[:, :OUT].set(
        w3.astype(jnp.bfloat16))
    b3p = jnp.full((1, OUT_PAD), -1e30, jnp.float32).at[:, :OUT].set(b3)

    # Batch tile: full batch if small; 512-row tiles (v7x VMEM-safe) otherwise.
    TB = min(batch_tile, B)
    grid = (pl.cdiv(B, TB),)

    flops = 2 * B * (F * H1 + H1 * H2 + H2 * OUT_PAD)
    transcendentals = B * OUT_PAD
    bytes_accessed = (
        xb.size * 2 + w1b.size * 2 + w2b.size * 2 + w3p.size * 2
        + b1.size * 4 + b2.size * 4 + b3p.size * 4
        + B * OUT_PAD * 4)

    out_padded = pl.pallas_call(
        mlp_kernel,
        out_shape=jax.ShapeDtypeStruct((B, OUT_PAD), jnp.float32),
        grid=grid,
        in_specs=[
            pl.BlockSpec((TB, F), lambda i: (i, 0)),        # x: batch-tiled
            pl.BlockSpec((F, H1), lambda i: (0, 0)),        # weights/biases stay
            pl.BlockSpec((1, H1), lambda i: (0, 0)),        # resident across the
            pl.BlockSpec((H1, H2), lambda i: (0, 0)),       # batch grid axis
            pl.BlockSpec((1, H2), lambda i: (0, 0)),
            pl.BlockSpec((H2, OUT_PAD), lambda i: (0, 0)),
            pl.BlockSpec((1, OUT_PAD), lambda i: (0, 0)),
        ],
        out_specs=pl.BlockSpec((TB, OUT_PAD), lambda i: (i, 0)),
        compiler_params=pltpu.CompilerParams(
            dimension_semantics=("parallel",)),               # megacore on v7x
        cost_estimate=pl.CostEstimate(
            flops=flops,
            transcendentals=transcendentals,
            bytes_accessed=bytes_accessed),
    )(xb, w1b, b1, w2b, b2, w3p, b3p)

    return out_padded[:, :OUT]


def init_params(key, input_size, layer_sizes, output_size):
    """Deterministic init mimicking nn.Linear default (uniform +-1/sqrt(fan_in))."""
    params = []
    dims = [input_size] + list(layer_sizes) + [output_size]
    for i in range(len(dims) - 1):
        fan_in, fan_out = dims[i], dims[i + 1]
        key, kw, kb = jax.random.split(key, 3)
        bound = 1.0 / jnp.sqrt(fan_in)
        w = jax.random.uniform(kw, (fan_in, fan_out), jnp.float32, -bound, bound)
        b = jax.random.uniform(kb, (1, fan_out), jnp.float32, -bound, bound)
        params.append((w, b))
    return params


if __name__ == "__main__":
    # Synthetic config (consistent with SimpleNN.__init__); relu activation,
    # dropout=0 (inference no-op).
    config = {
        "model": {
            "input_size": 32,
            "layer_sizes": [64, 32],
            "activation": "relu",
            "dropout": 0.0,
            "output_size": 16,
        }
    }
    B = 8

    key = jax.random.PRNGKey(0)
    key, kx = jax.random.split(key)
    x = jax.random.normal(kx, (B, config["model"]["input_size"]), jnp.float32)

    params = init_params(
        key,
        config["model"]["input_size"],
        config["model"]["layer_sizes"],
        config["model"]["output_size"],
    )

    out = simple_nn_forward(x, params)
    out = jax.block_until_ready(out)

    # Pure-JAX reference using the same bf16 matmul inputs / f32 accumulation.
    (w1, b1), (w2, b2), (w3, b3) = params
    h = jnp.maximum(
        jnp.dot(x.astype(jnp.bfloat16), w1.astype(jnp.bfloat16),
                preferred_element_type=jnp.float32) + b1, 0.0)
    h = jnp.maximum(
        jnp.dot(h.astype(jnp.bfloat16), w2.astype(jnp.bfloat16),
                preferred_element_type=jnp.float32) + b2, 0.0)
    logits = jnp.dot(h.astype(jnp.bfloat16), w3.astype(jnp.bfloat16),
                     preferred_element_type=jnp.float32) + b3
    ref = jax.nn.softmax(logits, axis=1)

    assert out.shape == (B, config["model"]["output_size"])
    # approx reciprocal + bf16 inputs -> slightly looser tolerances.
    assert jnp.allclose(jnp.sum(out, axis=1), 1.0, atol=1e-2)
    assert jnp.allclose(out, ref, atol=1e-2)

    print("KERNEL_OK")
</pallas_src>

<mosaic_0001>
module attributes {stable_mosaic.version = 11 : i64} {
  func.func @mlp_kernel(%arg0: i32, %arg1: memref<8x32xbf16, #tpu.memory_space<vmem>>, %arg2: memref<32x64xbf16, #tpu.memory_space<vmem>>, %arg3: memref<1x64xf32, #tpu.memory_space<vmem>>, %arg4: memref<64x32xbf16, #tpu.memory_space<vmem>>, %arg5: memref<1x32xf32, #tpu.memory_space<vmem>>, %arg6: memref<32x128xbf16, #tpu.memory_space<vmem>>, %arg7: memref<1x128xf32, #tpu.memory_space<vmem>>, %arg8: memref<8x128xf32, #tpu.memory_space<vmem>>) attributes {dimension_semantics = [#tpu.dimension_semantics<parallel>], iteration_bounds = array<i64: 1>, scalar_prefetch = 0 : i64, scratch_operands = 0 : i64, tpu.core_type = #tpu.core_type<tc>, window_params = [{transform_indices = @transform_0, window_bounds = array<i64: 8, 32>}, {pipeline_mode = #tpu.pipeline_mode<synchronous>, transform_indices = @transform_1, window_bounds = array<i64: 32, 64>}, {pipeline_mode = #tpu.pipeline_mode<synchronous>, transform_indices = @transform_2, window_bounds = array<i64: 1, 64>}, {pipeline_mode = #tpu.pipeline_mode<synchronous>, transform_indices = @transform_3, window_bounds = array<i64: 64, 32>}, {pipeline_mode = #tpu.pipeline_mode<synchronous>, transform_indices = @transform_4, window_bounds = array<i64: 1, 32>}, {pipeline_mode = #tpu.pipeline_mode<synchronous>, transform_indices = @transform_5, window_bounds = array<i64: 32, 128>}, {pipeline_mode = #tpu.pipeline_mode<synchronous>, transform_indices = @transform_6, window_bounds = array<i64: 1, 128>}, {transform_indices = @transform_7, window_bounds = array<i64: 8, 128>}]} {
    %c0 = arith.constant 0 : index
    %c0_0 = arith.constant 0 : index
    %0 = vector.load %arg1[%c0, %c0_0] : memref<8x32xbf16, #tpu.memory_space<vmem>>, vector<8x32xbf16>
    %c0_1 = arith.constant 0 : index
    %c0_2 = arith.constant 0 : index
    %1 = vector.load %arg2[%c0_1, %c0_2] : memref<32x64xbf16, #tpu.memory_space<vmem>>, vector<32x64xbf16>
    %cst = arith.constant dense<0.000000e+00> : vector<8x64xf32>
    %2 = tpu.matmul %0, %1, %cst {dimension_numbers = #tpu.dot_dimension_numbers<[1], [0], [0], [1], [0, 0, 1, 1], [], []>} : vector<8x32xbf16>, vector<32x64xbf16>, vector<8x64xf32> -> vector<8x64xf32>
    %c0_3 = arith.constant 0 : index
    %c0_4 = arith.constant 0 : index
    %3 = vector.load %arg3[%c0_3, %c0_4] : memref<1x64xf32, #tpu.memory_space<vmem>>, vector<1x64xf32>
    %4 = vector.broadcast %3 : vector<1x64xf32> to vector<8x64xf32>
    %5 = arith.addf %2, %4 : vector<8x64xf32>
    %cst_5 = arith.constant 0.000000e+00 : f32
    %6 = vector.broadcast %cst_5 : f32 to vector<8x64xf32>
    %7 = arith.maximumf %5, %6 : vector<8x64xf32>
    %8 = arith.truncf %7 : vector<8x64xf32> to vector<8x64xbf16>
    %c0_6 = arith.constant 0 : index
    %c0_7 = arith.constant 0 : index
    %9 = vector.load %arg4[%c0_6, %c0_7] : memref<64x32xbf16, #tpu.memory_space<vmem>>, vector<64x32xbf16>
    %cst_8 = arith.constant dense<0.000000e+00> : vector<8x32xf32>
    %10 = tpu.matmul %8, %9, %cst_8 {dimension_numbers = #tpu.dot_dimension_numbers<[1], [0], [0], [1], [0, 0, 1, 1], [], []>} : vector<8x64xbf16>, vector<64x32xbf16>, vector<8x32xf32> -> vector<8x32xf32>
    %c0_9 = arith.constant 0 : index
    %c0_10 = arith.constant 0 : index
    %11 = vector.load %arg5[%c0_9, %c0_10] : memref<1x32xf32, #tpu.memory_space<vmem>>, vector<1x32xf32>
    %12 = vector.broadcast %11 : vector<1x32xf32> to vector<8x32xf32>
    %13 = arith.addf %10, %12 : vector<8x32xf32>
    %cst_11 = arith.constant 0.000000e+00 : f32
    %14 = vector.broadcast %cst_11 : f32 to vector<8x32xf32>
    %15 = arith.maximumf %13, %14 : vector<8x32xf32>
    %16 = arith.truncf %15 : vector<8x32xf32> to vector<8x32xbf16>
    %c0_12 = arith.constant 0 : index
    %c0_13 = arith.constant 0 : index
    %17 = vector.load %arg6[%c0_12, %c0_13] : memref<32x128xbf16, #tpu.memory_space<vmem>>, vector<32x128xbf16>
    %cst_14 = arith.constant dense<0.000000e+00> : vector<8x128xf32>
    %18 = tpu.matmul %16, %17, %cst_14 {dimension_numbers = #tpu.dot_dimension_numbers<[1], [0], [0], [1], [0, 0, 1, 1], [], []>} : vector<8x32xbf16>, vector<32x128xbf16>, vector<8x128xf32> -> vector<8x128xf32>
    %c0_15 = arith.constant 0 : index
    %c0_16 = arith.constant 0 : index
    %19 = vector.load %arg7[%c0_15, %c0_16] : memref<1x128xf32, #tpu.memory_space<vmem>>, vector<1x128xf32>
    %20 = vector.broadcast %19 : vector<1x128xf32> to vector<8x128xf32>
    %21 = arith.addf %18, %20 : vector<8x128xf32>
    %cst_17 = arith.constant dense<0xFF800000> : vector<8xf32>
    %22 = vector.multi_reduction <maximumf>, %21, %cst_17 [1] : vector<8x128xf32> to vector<8xf32>
    %23 = vector.shape_cast %22 : vector<8xf32> to vector<8x1xf32>
    %24 = vector.broadcast %23 : vector<8x1xf32> to vector<8x128xf32>
    %25 = arith.subf %21, %24 : vector<8x128xf32>
    %26 = math.exp %25 : vector<8x128xf32>
    %cst_18 = arith.constant dense<0.000000e+00> : vector<8xf32>
    %27 = vector.multi_reduction <add>, %26, %cst_18 [1] : vector<8x128xf32> to vector<8xf32>
    %28 = vector.shape_cast %27 : vector<8xf32> to vector<8x1xf32>
    %29 = tpu.reciprocal %28 {approx = true} : vector<8x1xf32> -> vector<8x1xf32>
    %30 = vector.broadcast %29 : vector<8x1xf32> to vector<8x128xf32>
    %31 = arith.mulf %26, %30 : vector<8x128xf32>
    %c0_19 = arith.constant 0 : index
    %c0_20 = arith.constant 0 : index
    %32 = vector.load %arg8[%c0_19, %c0_20] : memref<8x128xf32, #tpu.memory_space<vmem>>, vector<8x128xf32>
    tpu.vector_store %arg8[%c0_19, %c0_20], %31 {strides = array<i32>} : memref<8x128xf32, #tpu.memory_space<vmem>>, vector<8x128xf32>,
    return
  }
  func.func @transform_0(%arg0: i32) -> (i32, i32) {
    %c0_i32 = arith.constant 0 : i32
    %c0_i32_0 = arith.constant 0 : i32
    return %arg0, %c0_i32 : i32, i32
  }
  func.func @transform_1(%arg0: i32) -> (i32, i32) {
    %c0_i32 = arith.constant 0 : i32
    %c0_i32_0 = arith.constant 0 : i32
    %c0_i32_1 = arith.constant 0 : i32
    return %c0_i32, %c0_i32_0 : i32, i32
  }
  func.func @transform_2(%arg0: i32) -> (i32, i32) {
    %c0_i32 = arith.constant 0 : i32
    %c0_i32_0 = arith.constant 0 : i32
    %c0_i32_1 = arith.constant 0 : i32
    return %c0_i32, %c0_i32_0 : i32, i32
  }
  func.func @transform_3(%arg0: i32) -> (i32, i32) {
    %c0_i32 = arith.constant 0 : i32
    %c0_i32_0 = arith.constant 0 : i32
    %c0_i32_1 = arith.constant 0 : i32
    return %c0_i32, %c0_i32_0 : i32, i32
  }
  func.func @transform_4(%arg0: i32) -> (i32, i32) {
    %c0_i32 = arith.constant 0 : i32
    %c0_i32_0 = arith.constant 0 : i32
    %c0_i32_1 = arith.constant 0 : i32
    return %c0_i32, %c0_i32_0 : i32, i32
  }
  func.func @transform_5(%arg0: i32) -> (i32, i32) {
    %c0_i32 = arith.constant 0 : i32
    %c0_i32_0 = arith.constant 0 : i32
    %c0_i32_1 = arith.constant 0 : i32
    return %c0_i32, %c0_i32_0 : i32, i32
  }
  func.func @transform_6(%arg0: i32) -> (i32, i32) {
    %c0_i32 = arith.constant 0 : i32
    %c0_i32_0 = arith.constant 0 : i32
    %c0_i32_1 = arith.constant 0 : i32
    return %c0_i32, %c0_i32_0 : i32, i32
  }
  func.func @transform_7(%arg0: i32) -> (i32, i32) {
    %c0_i32 = arith.constant 0 : i32
    %c0_i32_0 = arith.constant 0 : i32
    return %arg0, %c0_i32 : i32, i32
  }
}

</mosaic_0001>

<bundles_post_ra>
// kernel: tpu_custom_call.1
= control target key start
LH: loop header
LB: loop body
LE: loop exit
PB: predicated region body
PF: predicated region fallthrough
CT: control target
= control target key end

     0   :  { %v363_v1 = vmov 0.0   ;;  %vm364_vm0 = vmmov 0   ;;  %vm52_vm1 = vcmask 261120   ;;  %s450_s0 = inlined_call_operand.vmem [shape: bf16[8,32], index: 0, kind: input, shape index: {}]   ;;  %s451_s1 = inlined_call_operand.vmem [shape: bf16[32,64], index: 1, kind: input, shape index: {}]   ;;  %s452_s2 = inlined_call_operand.vmem [shape: f32[1,64], index: 2, kind: input, shape index: {}]   ;;  %s453_s3 = inlined_call_operand.vmem [shape: bf16[64,32], index: 3, kind: input, shape index: {}]   ;;  %s454_s4 = inlined_call_operand.vmem [shape: f32[1,32], index: 4, kind: input, shape index: {}]   ;;  %s455_s5 = inlined_call_operand.vmem [shape: bf16[32,128], index: 5, kind: input, shape index: {}]   ;;  %s456_s6 = inlined_call_operand.vmem [shape: f32[1,128], index: 6, kind: input, shape index: {}]   ;;  %s457_s7 = inlined_call_operand.hbm [shape: f32[8,128], index: 7, kind: output, shape index: {}]  }
   0x1   :  { %v329_v0 = vld [vmem:[%s451_s1 + $0x8] sm:$0xff]   ;;  %298 = vmatprep.subr.bf16.mxu0 %v363_v1  ;;  %306 = vmatprep.subr.bf16.mxu1 %v363_v1  ;;  %v330_v2 = vld [vmem:[%s451_s1] sm:$0xff]   ;;  %v331_v3 = vld [vmem:[%s453_s3 + $0x18] sm:$0xff]  }
   0x2   :  { %299 = vmatpush3.bf16.msra.mxu0 %v329_v0  ;;  %302 = vmatprep.mubr.msk.bf16.mxu0 %vm364_vm0, %v363_v1  ;;  %v28_v4 = vld [vmem:[%s450_s0] sm:$0xf]  ;;  %v332_v5 = vld [vmem:[%s453_s3 + $0x10] sm:$0xff]  }
   0x3   :  { %300 = vmatprep.subr.bf16.mxu0 %v363_v1  ;;  %314 = vmatprep.mubr.msk.bf16.mxu1 %vm364_vm0, %v363_v1 }
   0x4   :  { %307 = vmatpush3.bf16.msra.mxu1 %v331_v3 }
   0x5   :  { %308 = vmatprep.subr.bf16.mxu1 %v363_v1 }
   0x6   :  { %301 = vmatpush3.bf16.msra.mxu0 %v330_v2 }
   0x7   :  { %318 = vmatprep.subr.bf16.mxu0 %v363_v1 }
   0x8   :  { %12 = vsyncpa [#allocation3], 0  ;;  %309 = vmatpush3.bf16.msra.mxu1 %v332_v5  ;;  %v333_v6 = vld [vmem:[%s453_s3 + $0x8] sm:$0xff]   ;;  %v334_v7 = vld [vmem:[%s453_s3] sm:$0xff]   ;;  %vm137_vm2 = vcmask 523264  }
   0x9   :  { %303 = vmatmul.mubr.msk.bf16.vlgmr.msra.gmra.mxu0 %vm52_vm1, %v28_v4  ;;  %310 = vmatprep.subr.bf16.mxu1 %v363_v1  ;;  %v335_v8 = vld [vmem:[%s455_s5 + $0x8] sm:$0xff]   ;;  %v273_v9 = vld [vmem:[%s452_s2] ss:$0 sm:$0xff] }
   0xa   :  { %322 = vmatprep.mubr.msk.bf16.mxu0 %vm364_vm0, %v363_v1  ;;  %319 = vmatpush3.bf16.msra.mxu0 %v335_v8  ;;  %v336_v17 = vld [vmem:[%s455_s5] sm:$0xff]  }
   0xb   :  { %320 = vmatprep.subr.bf16.mxu0 %v363_v1  ;;  %v277_v18 = vld [vmem:[%s454_s4] ss:$0 sm:$0xff]  ;;  %s365_s4 = smov [#allocation2]  }
   0xc   :  { %311 = vmatpush3.bf16.msra.mxu1 %v333_v6  ;;  %v283_v26 = vld [vmem:[%s456_s6] ss:$0 sm:$0xff]  ;;  %s265_s5 = sshll.u32 %s365_s4, 4  ;;  %s266_s5 = int_to_ptr.vmem [resolvable:$true] %s265_s5 }
   0xd   :  { %312 = vmatprep.subr.bf16.mxu1 %v363_v1  ;;  %s341_s6 = scalar_lea.vmem %s266_s5, 128  ;;  %p346_p1 = scmp.lt.s32.totalorder %s266_s5, %s266_s5 }
   0xe   :  { %321 = vmatpush3.bf16.msra.mxu0 %v336_v17  ;;  %p342_p0 = scmp.ne.s32.totalorder %s266_s5, %s341_s6  ;;  %p347_p2 = scmp.lt.s32.totalorder %s341_s6, %s341_s6 }
  0x10   :  { %313 = vmatpush3.bf16.msra.mxu1 %v334_v7  ;;  %p348_p3 = por %p347_p2, %p346_p1 }
  0x12   :  { %p349_p4 = pnand %p348_p3, %p342_p0 }
  0xc9   :  { %v90_v10 = vpop.f32.mrf.mxu0 }
  0xca   :  { %v91_v11 = vadd.f32 %v273_v9, %v90_v10 }
  0xcb   :  { %v304_v12 = vpop.f32.mrf.mxu0 }
  0xcc   :  { %v96_v13 = vmax.f32 %v91_v11, 0.0 }
  0xcd   :  { %v93_v14 = vpop.f32.mrf.mxu0 }
  0xce   :  { %v97_v15 = vpack.c.bf16 %v96_v13, %v96_v13 }
  0xcf   :  { %v305_v16 = vpop.f32.mrf.mxu0 }
  0xd0   :  { %315 = vmatmul.mubr.msk.bf16.vlgmr.msra.gmra.mxu1 %vm137_vm2, %v97_v15 }
 0x190   :  { %v175_v19 = vpop.f32.mrf.mxu1 }
 0x191   :  { %v176_v20 = vadd.f32 %v277_v18, %v175_v19 }
 0x192   :  { %v316_v21 = vpop.f32.mrf.mxu1 }
 0x193   :  { %v181_v22 = vmax.f32 %v176_v20, 0.0 }
 0x194   :  { %v178_v23 = vpop.f32.mrf.mxu1 }
 0x195   :  { %v182_v24 = vpack.c.bf16 %v181_v22, %v181_v22 }
 0x196   :  { %v317_v25 = vpop.f32.mrf.mxu1 }
 0x197   :  { %323 = vmatmul.mubr.msk.bf16.vlgmr.msra.gmra.mxu0 %vm52_vm1, %v182_v24 }
 0x257   :  { %v243_v27 = vpop.f32.mrf.mxu0 }
 0x258   :  { %v244_v28 = vadd.f32 %v283_v26, %v243_v27 }
 0x259   :  { %v324_v29 = vpop.f32.mrf.mxu0 }
 0x25a   :  { %249 = vmax.xlane.f32.xlu0 %v244_v28 }
 0x25b   :  { %v246_v30 = vpop.f32.mrf.mxu0 }
 0x25d   :  { %v325_v31 = vpop.f32.mrf.mxu0 }
 0x2e3   :  { %v250_v32 = vpop.xlane.xlu0 %249 }
 0x2e4   :  { %v251_v33 = vsub.f32 %v244_v28, %v250_v32 }
 0x2e6   :  { %v252_v34 = vmul.f32 1.442695, %v251_v33 }
 0x2e8   :  { %337 = vpow2.f32 %v252_v34 }
 0x2f5   :  { %v338_v35 = vpop.eup %337 }
 0x2f6   :  { %254 = vadd.xlane.f32.xlu0 %v338_v35 }
 0x37f   :  { %v255_v36 = vpop.xlane.xlu0 %254 }
 0x380   :  { %339 = vrcp.f32 %v255_v36 }
 0x38d   :  { %v340_v37 = vpop.eup %339 }
 0x38e   :  { %v257_v38 = vmul.f32 %v340_v37, %v338_v35 }
 0x390   :  { %258 = vst [vmem:[#allocation2] sm:$0xff] %v257_v38 }
 0x391   :  { %352 = shalt.err (!%p349_p4)
}
 0x392   :  { %268 = dma.vmem_to_hbm [thread:$0]  %s266_s5, 128, %s457_s7, [#allocation3]  }
 0x393   :  { %361 = dma.done.wait [#allocation3], 128  }
 0x394   :  { %362 = vsyncadd [#allocation3], 4294967168 }
 0x395   :  { %272 = vsyncpa [#allocation3], 1 }

</bundles_post_ra>
